<compile_context>
chip_gen: v5e
topology: v5e:2x2
jax: 0.10.0
libtpu: 0.0.40
codegen_flags: <defaults>
</compile_context>

<pallas_src>
import functools

import jax
import jax.numpy as jnp
from jax.experimental import pallas as pl
from jax.experimental.pallas import tpu as pltpu


def _round_up(x, m):
    return ((x + m - 1) // m) * m


def _cdiv(a, b):
    return -(-a // b)


def _default_num_splits():
    """2 grid splits only on chips with two TensorCores (v7x); 1 elsewhere."""
    try:
        kind = jax.devices()[0].device_kind.lower()
    except Exception:
        return 1
    if "v7" in kind or "7x" in kind:
        return 2
    return 1


# ---------------------------------------------------------------------------
# Pallas kernel: per-atom layer-1 + SiLU, lane-dense segment-sum accumulation,
# one-shot layer-2 finalize per split.
# ---------------------------------------------------------------------------
def _atomwise_kernel(idx_ref, x_ref, w1_ref, b1_ref, w2_ref,
                     out_ref, acc_ref, *, max_m_p):
    t = pl.program_id(1)

    @pl.when(t == 0)
    def _():
        acc_ref[...] = jnp.zeros_like(acc_ref)

    # ---- per-atom MLP, layer 1 (+ SiLU), f32 accumulation ------------------
    x = x_ref[...]                                            # (tile_n, n_in)
    h = jnp.dot(x, w1_ref[...], preferred_element_type=jnp.float32)
    h = h + b1_ref[...]                                       # (tile_n, n_hidden_p)
    h = h * jax.lax.logistic(h)                               # SiLU (EUP, f32)

    # ---- lane-dense one-hot segment sum over molecules ---------------------
    # one-hot built directly in the matmul input dtype (0/1 exact in bf16)
    idx = idx_ref[0]                                          # (1, tile_n) int32
    tile_n = idx.shape[-1]
    m_iota = jax.lax.broadcasted_iota(jnp.int32, (max_m_p, tile_n), 0)
    onehot = (m_iota == idx).astype(x.dtype)                  # (max_m_p, tile_n)
    # A[m, :] += sum_{i in tile, idx[i]==m} h[i, :]   (n_hidden_p lanes wide)
    acc_ref[...] += jnp.dot(onehot, h.astype(x.dtype),
                            preferred_element_type=jnp.float32)

    # ---- finalize: second dense layer applied once per split ---------------
    @pl.when(t == pl.num_programs(1) - 1)
    def _():
        y = jnp.dot(acc_ref[...], w2_ref[...],
                    preferred_element_type=jnp.float32)       # (max_m_p, n_out)
        out_ref[...] = y[None].astype(out_ref.dtype)


# ---------------------------------------------------------------------------
# Wrapper: padding, tiling, pallas_call, aggregation post-processing
# ---------------------------------------------------------------------------
def atomwise_forward(x, idx_m, params, *, max_m, n_atoms_per_mol=None,
                     aggregation_mode="sum", tile_n=2048, num_splits=None,
                     compute_dtype=jnp.bfloat16):
    """
    x:       (N, n_in)  float32   scalar_representation
    idx_m:   (N,)       int32     molecule index per atom (in [0, max_m));
                                  out-of-range indices are silently dropped.
    params:  dict with w1 (n_in, n_hidden), b1 (n_hidden,),
                        w2 (n_hidden, n_out), b2 (n_out,)
    Returns: (max_m,) if n_out == 1 else (max_m, n_out)
    """
    n_atoms, n_in = x.shape
    n_hidden = params["w1"].shape[1]
    n_out = params["w2"].shape[1]

    if num_splits is None:
        num_splits = _default_num_splits()

    # lane-pad hidden dim to x128, sublane-pad molecule dim to x8 (exact: the
    # padded w1 columns / b1 entries / w2 rows are zero -> contribute nothing)
    n_hidden_p = _round_up(n_hidden, 128)
    max_m_p = _round_up(max(max_m, 8), 8)

    # ---- tile / split selection --------------------------------------------
    if n_atoms <= tile_n:
        tile_eff = _round_up(max(n_atoms, 8), 8)   # single grid step
        num_tiles = 1
        splits = 1
    else:
        tile_eff = _round_up(tile_n, 8)
        num_tiles = _cdiv(n_atoms, tile_eff)
        splits = max(1, min(num_splits, num_tiles))
        num_tiles = _round_up(num_tiles, splits)
    tiles_per_split = num_tiles // splits
    n_pad = num_tiles * tile_eff

    # ---- padding: padded atoms get idx == max_m_p (out of range, no effect) --
    x_pad = jnp.pad(x.astype(compute_dtype), ((0, n_pad - n_atoms), (0, 0)))
    idx_pad = jnp.pad(idx_m.astype(jnp.int32), (0, n_pad - n_atoms),
                      constant_values=max_m_p)
    idx3d = idx_pad.reshape(num_tiles, 1, tile_eff)            # lane-dense idx

    w1 = jnp.zeros((n_in, n_hidden_p), compute_dtype)
    w1 = w1.at[:, :n_hidden].set(params["w1"].astype(compute_dtype))
    b1 = jnp.zeros((1, n_hidden_p), jnp.float32)
    b1 = b1.at[:, :n_hidden].set(params["b1"].astype(jnp.float32)[None, :])
    w2 = jnp.zeros((n_hidden_p, n_out), jnp.float32)
    w2 = w2.at[:n_hidden, :].set(params["w2"].astype(jnp.float32))
    b2 = params["b2"].reshape(1, n_out).astype(jnp.float32)

    # ---- VMEM budget + cost estimate ---------------------------------------
    itemsize = jnp.dtype(compute_dtype).itemsize
    vmem_bytes = (
        2 * (tile_eff * n_in * itemsize + tile_eff * 4)           # x + idx (2-buf)
        + (n_in * n_hidden_p * itemsize + n_hidden_p * 4
           + n_hidden_p * n_out * 4)                              # weights
        + 2 * max_m_p * n_out * 4                                 # out block
        + max_m_p * n_hidden_p * 4                                # acc scratch
        + tile_eff * n_hidden_p * 4                               # h temporary
        + max_m_p * tile_eff * (4 + itemsize))                    # iota + one-hot
    # real footprint is a few MiB; leave headroom (v7x has only 64 MiB / TC)
    vmem_limit = int(min(48 * 1024 * 1024, max(4 * 1024 * 1024, 2 * vmem_bytes)))

    flops = (2 * n_pad * n_in * n_hidden_p                  # layer 1
             + 2 * n_pad * max_m_p * n_hidden_p             # one-hot segment sum
             + 2 * splits * max_m_p * n_hidden_p * n_out)   # finalize
    cost = pl.CostEstimate(
        flops=flops,
        transcendentals=n_pad * n_hidden_p,                 # logistic in SiLU
        bytes_accessed=(n_pad * n_in * itemsize + n_pad * 4
                        + n_in * n_hidden_p * itemsize + n_hidden_p * 4
                        + n_hidden_p * n_out * 4
                        + splits * max_m_p * n_out * 4))

    kernel = functools.partial(_atomwise_kernel, max_m_p=max_m_p)

    def _run(single_buffer_weights):
        const_kw = ({"pipeline_mode": pl.Buffered(1)}
                    if single_buffer_weights else {})
        grid_spec = pltpu.PrefetchScalarGridSpec(
            num_scalar_prefetch=0,
            grid=(splits, tiles_per_split),
            in_specs=[
                pl.BlockSpec((1, 1, tile_eff),
                             lambda s, t: (s * tiles_per_split + t, 0, 0)),
                pl.BlockSpec((tile_eff, n_in),
                             lambda s, t: (s * tiles_per_split + t, 0)),
                pl.BlockSpec((n_in, n_hidden_p), lambda s, t: (0, 0), **const_kw),
                pl.BlockSpec((1, n_hidden_p), lambda s, t: (0, 0), **const_kw),
                pl.BlockSpec((n_hidden_p, n_out), lambda s, t: (0, 0), **const_kw),
            ],
            out_specs=pl.BlockSpec((1, max_m_p, n_out), lambda s, t: (s, 0, 0)),
            scratch_shapes=[pltpu.VMEM((max_m_p, n_hidden_p), jnp.float32)],
        )
        return pl.pallas_call(
            kernel,
            out_shape=jax.ShapeDtypeStruct((splits, max_m_p, n_out), jnp.float32),
            grid_spec=grid_spec,
            compiler_params=pltpu.CompilerParams(
                dimension_semantics=("parallel", "arbitrary"),
                vmem_limit_bytes=vmem_limit),
            cost_estimate=cost,
        )(idx3d, x_pad, w1, b1, w2)

    try:
        y_part = _run(True)          # single-buffered constant weights
    except Exception:
        y_part = _run(False)         # fallback: default double-buffering

    # sum split partials, drop molecule padding
    y_mol = jnp.sum(y_part, axis=0)[:max_m]                    # (max_m, n_out)

    # per-molecule atom counts, computed once on the host-side JAX graph
    # (replaces the per-tile XLU reduce that used to live in the hot loop)
    counts = jax.ops.segment_sum(jnp.ones((n_atoms,), jnp.float32),
                                 idx_m, num_segments=max_m)    # (max_m,)
    y_mol = y_mol + counts[:, None] * b2                       # last-layer bias

    if aggregation_mode == "avg":
        if n_atoms_per_mol is not None:
            n = n_atoms_per_mol.reshape(max_m, 1).astype(jnp.float32)
        else:
            n = counts[:, None]
        y_mol = jnp.where(n > 0, y_mol / jnp.maximum(n, 1.0), 0.0)

    # torch.squeeze(y, -1)
    if n_out == 1:
        y_mol = jnp.squeeze(y_mol, -1)
    return y_mol


# ---------------------------------------------------------------------------
# Deterministic parameter init (pyramidal MLP: n_in -> n_in//2 -> n_out,
# SiLU between, biases on both layers — matches build_mlp defaults, n_layers=2)
# ---------------------------------------------------------------------------
def init_params(key, n_in, n_out=1):
    n_hidden = max(n_out, n_in // 2)
    k1, k2, k3, k4 = jax.random.split(key, 4)
    s1 = 1.0 / jnp.sqrt(n_in)
    s2 = 1.0 / jnp.sqrt(n_hidden)
    return {
        "w1": jax.random.uniform(k1, (n_in, n_hidden), jnp.float32, -s1, s1),
        "b1": jax.random.uniform(k2, (n_hidden,), jnp.float32, -s1, s1),
        "w2": jax.random.uniform(k3, (n_hidden, n_out), jnp.float32, -s2, s2),
        "b2": jax.random.uniform(k4, (n_out,), jnp.float32, -s2, s2),
    }


def _reference(x, idx_m, params, max_m, compute_dtype=jnp.bfloat16):
    """Pure-JAX reference mirroring the kernel's mixed-precision choices."""
    xc = x.astype(compute_dtype)
    w1 = params["w1"].astype(compute_dtype)
    h = jnp.dot(xc, w1, preferred_element_type=jnp.float32) + params["b1"][None, :]
    h = jax.nn.silu(h)
    h = h.astype(compute_dtype).astype(jnp.float32)
    hs = jax.ops.segment_sum(h, idx_m, num_segments=max_m)
    counts = jax.ops.segment_sum(jnp.ones((x.shape[0],), jnp.float32),
                                 idx_m, num_segments=max_m)
    y = hs @ params["w2"].astype(jnp.float32) + counts[:, None] * params["b2"][None, :]
    return jnp.squeeze(y, -1)


# ---------------------------------------------------------------------------
if __name__ == "__main__":
    key = jax.random.PRNGKey(0)
    k_x1, k_x2, k_p = jax.random.split(key, 3)

    n_in = 32          # representation dim
    n_out = 1
    max_m = 4          # number of molecules in the batch
    params = init_params(k_p, n_in, n_out)

    # ---- case 1: small problem, single grid step, default bf16, "sum" ------
    atoms_per_mol = 16
    n_atoms = max_m * atoms_per_mol                      # 64 atoms
    x1 = jax.random.normal(k_x1, (n_atoms, n_in), jnp.float32)
    idx1 = jnp.repeat(jnp.arange(max_m, dtype=jnp.int32), atoms_per_mol)

    y1 = jax.block_until_ready(
        atomwise_forward(x1, idx1, params, max_m=max_m, aggregation_mode="sum"))
    y1_ref = _reference(x1, idx1, params, max_m)
    assert y1.shape == (max_m,)
    assert jnp.allclose(y1, y1_ref, atol=1e-3, rtol=1e-3), (y1, y1_ref)

    # ---- case 2: multi-tile grid, 2-way split, atom padding, "avg" ----------
    atoms_per_mol2 = 15
    n_atoms2 = max_m * atoms_per_mol2                    # 60 atoms (not a tile multiple)
    x2 = jax.random.normal(k_x2, (n_atoms2, n_in), jnp.float32)
    idx2 = jnp.repeat(jnp.arange(max_m, dtype=jnp.int32), atoms_per_mol2)
    n_atoms_vec2 = jnp.full((max_m,), atoms_per_mol2, jnp.int32)

    y2 = jax.block_until_ready(
        atomwise_forward(x2, idx2, params, max_m=max_m,
                         n_atoms_per_mol=n_atoms_vec2, aggregation_mode="avg",
                         tile_n=16, num_splits=2))
    y2_ref = _reference(x2, idx2, params, max_m) / atoms_per_mol2
    assert y2.shape == (max_m,)
    assert jnp.allclose(y2, y2_ref, atol=1e-3, rtol=1e-3), (y2, y2_ref)

    # ---- case 3: exact f32 compute path (tight tolerance) -------------------
    y3 = jax.block_until_ready(
        atomwise_forward(x1, idx1, params, max_m=max_m, aggregation_mode="sum",
                         compute_dtype=jnp.float32))
    y3_ref = _reference(x1, idx1, params, max_m, compute_dtype=jnp.float32)
    assert jnp.allclose(y3, y3_ref, atol=1e-4, rtol=1e-4), (y3, y3_ref)

    # TODO(synk): per_atom_output_key / aggregation_mode=None (per-atom outputs)
    # are host-side dict plumbing + a separate per-atom output path; only the
    # aggregated molecular output is produced by this kernel.
    print("KERNEL_OK")
</pallas_src>

<mosaic_0001>
module attributes {stable_mosaic.version = 11 : i64} {
  func.func @_atomwise_kernel(%arg0: i32, %arg1: i32, %arg2: memref<1x1x64xi32, #tpu.memory_space<vmem>>, %arg3: memref<64x32xbf16, #tpu.memory_space<vmem>>, %arg4: memref<32x128xbf16, #tpu.memory_space<vmem>>, %arg5: memref<1x128xf32, #tpu.memory_space<vmem>>, %arg6: memref<128x1xf32, #tpu.memory_space<vmem>>, %arg7: memref<1x8x1xf32, #tpu.memory_space<vmem>>, %arg8: memref<8x128xf32, #tpu.memory_space<vmem>>) attributes {dimension_semantics = [#tpu.dimension_semantics<parallel>, #tpu.dimension_semantics<arbitrary>], iteration_bounds = array<i64: 1, 1>, scalar_prefetch = 0 : i64, scratch_operands = 1 : i64, tpu.core_type = #tpu.core_type<tc>, window_params = [{transform_indices = @transform_0, window_bounds = array<i64: 1, 1, 64>}, {transform_indices = @transform_1, window_bounds = array<i64: 64, 32>}, {pipeline_mode = #tpu.pipeline_mode<synchronous>, transform_indices = @transform_2, window_bounds = array<i64: 32, 128>}, {pipeline_mode = #tpu.pipeline_mode<synchronous>, transform_indices = @transform_3, window_bounds = array<i64: 1, 128>}, {pipeline_mode = #tpu.pipeline_mode<synchronous>, transform_indices = @transform_4, window_bounds = array<i64: 128, 1>}, {transform_indices = @transform_5, window_bounds = array<i64: 1, 8, 1>}]} {
    %c0_i32 = arith.constant 0 : i32
    %0 = arith.cmpi eq, %arg1, %c0_i32 : i32
    %1 = arith.extui %0 : i1 to i32
    %c0_i32_0 = arith.constant 0 : i32
    %2 = arith.cmpi ne, %1, %c0_i32_0 : i32
    scf.if %2 {
      %cst_17 = arith.constant 0.000000e+00 : f32
      %31 = vector.broadcast %cst_17 : f32 to vector<8x128xf32>
      %c0_18 = arith.constant 0 : index
      %c0_19 = arith.constant 0 : index
      %32 = vector.load %arg8[%c0_18, %c0_19] : memref<8x128xf32, #tpu.memory_space<vmem>>, vector<8x128xf32>
      tpu.vector_store %arg8[%c0_18, %c0_19], %31 {strides = array<i32>} : memref<8x128xf32, #tpu.memory_space<vmem>>, vector<8x128xf32>,
    } else {
    }
    %c0 = arith.constant 0 : index
    %c0_1 = arith.constant 0 : index
    %3 = vector.load %arg3[%c0, %c0_1] : memref<64x32xbf16, #tpu.memory_space<vmem>>, vector<64x32xbf16>
    %c0_2 = arith.constant 0 : index
    %c0_3 = arith.constant 0 : index
    %4 = vector.load %arg4[%c0_2, %c0_3] : memref<32x128xbf16, #tpu.memory_space<vmem>>, vector<32x128xbf16>
    %cst = arith.constant dense<0.000000e+00> : vector<64x128xf32>
    %5 = tpu.matmul %3, %4, %cst {dimension_numbers = #tpu.dot_dimension_numbers<[1], [0], [0], [1], [0, 0, 1, 1], [], []>} : vector<64x32xbf16>, vector<32x128xbf16>, vector<64x128xf32> -> vector<64x128xf32>
    %c0_4 = arith.constant 0 : index
    %c0_5 = arith.constant 0 : index
    %6 = vector.load %arg5[%c0_4, %c0_5] : memref<1x128xf32, #tpu.memory_space<vmem>>, vector<1x128xf32>
    %7 = vector.broadcast %6 : vector<1x128xf32> to vector<64x128xf32>
    %8 = arith.addf %5, %7 : vector<64x128xf32>
    %9 = arith.negf %8 : vector<64x128xf32>
    %10 = math.exp %9 : vector<64x128xf32>
    %cst_6 = arith.constant 1.000000e+00 : f32
    %11 = vector.broadcast %cst_6 : f32 to vector<64x128xf32>
    %12 = arith.addf %11, %10 : vector<64x128xf32>
    %13 = arith.divf %11, %12 : vector<64x128xf32>
    %14 = arith.mulf %8, %13 : vector<64x128xf32>
    %c0_7 = arith.constant 0 : index
    %c0_8 = arith.constant 0 : index
    %c0_9 = arith.constant 0 : index
    %15 = vector.load %arg2[%c0_7, %c0_8, %c0_9] : memref<1x1x64xi32, #tpu.memory_space<vmem>>, vector<1x1x64xi32>
    %16 = vector.shape_cast %15 : vector<1x1x64xi32> to vector<1x64xi32>
    %17 = tpu.iota {dimensions = array<i32: 0>} : vector<8x64xi32>
    %18 = vector.broadcast %16 : vector<1x64xi32> to vector<8x64xi32>
    %19 = arith.cmpi eq, %17, %18 : vector<8x64xi32>
    %20 = arith.extui %19 : vector<8x64xi1> to vector<8x64xi32>
    %21 = arith.sitofp %20 : vector<8x64xi32> to vector<8x64xf32>
    %22 = arith.truncf %21 : vector<8x64xf32> to vector<8x64xbf16>
    %c0_10 = arith.constant 0 : index
    %c0_11 = arith.constant 0 : index
    %23 = vector.load %arg8[%c0_10, %c0_11] : memref<8x128xf32, #tpu.memory_space<vmem>>, vector<8x128xf32>
    %24 = arith.truncf %14 : vector<64x128xf32> to vector<64x128xbf16>
    %cst_12 = arith.constant dense<0.000000e+00> : vector<8x128xf32>
    %25 = tpu.matmul %22, %24, %cst_12 {dimension_numbers = #tpu.dot_dimension_numbers<[1], [0], [0], [1], [0, 0, 1, 1], [], []>} : vector<8x64xbf16>, vector<64x128xbf16>, vector<8x128xf32> -> vector<8x128xf32>
    %26 = arith.addf %23, %25 : vector<8x128xf32>
    %c0_13 = arith.constant 0 : index
    %c0_14 = arith.constant 0 : index
    %27 = vector.load %arg8[%c0_13, %c0_14] : memref<8x128xf32, #tpu.memory_space<vmem>>, vector<8x128xf32>
    tpu.vector_store %arg8[%c0_13, %c0_14], %26 {strides = array<i32>} : memref<8x128xf32, #tpu.memory_space<vmem>>, vector<8x128xf32>,
    %c0_i32_15 = arith.constant 0 : i32
    %28 = arith.cmpi eq, %arg1, %c0_i32_15 : i32
    %29 = arith.extui %28 : i1 to i32
    %c0_i32_16 = arith.constant 0 : i32
    %30 = arith.cmpi ne, %29, %c0_i32_16 : i32
    scf.if %30 {
      %c0_17 = arith.constant 0 : index
      %c0_18 = arith.constant 0 : index
      %31 = vector.load %arg8[%c0_17, %c0_18] : memref<8x128xf32, #tpu.memory_space<vmem>>, vector<8x128xf32>
      %c0_19 = arith.constant 0 : index
      %c0_20 = arith.constant 0 : index
      %32 = vector.load %arg6[%c0_19, %c0_20] : memref<128x1xf32, #tpu.memory_space<vmem>>, vector<128x1xf32>
      %cst_21 = arith.constant dense<0.000000e+00> : vector<8x1xf32>
      %33 = tpu.matmul %31, %32, %cst_21 {dimension_numbers = #tpu.dot_dimension_numbers<[1], [0], [0], [1], [0, 0, 1, 1], [], []>} : vector<8x128xf32>, vector<128x1xf32>, vector<8x1xf32> -> vector<8x1xf32>
      %34 = vector.shape_cast %33 : vector<8x1xf32> to vector<1x8x1xf32>
      %c0_22 = arith.constant 0 : index
      %c0_23 = arith.constant 0 : index
      %c0_24 = arith.constant 0 : index
      %35 = vector.load %arg7[%c0_22, %c0_23, %c0_24] : memref<1x8x1xf32, #tpu.memory_space<vmem>>, vector<1x8x1xf32>
      tpu.vector_store %arg7[%c0_22, %c0_23, %c0_24], %34 {strides = array<i32>} : memref<1x8x1xf32, #tpu.memory_space<vmem>>, vector<1x8x1xf32>,
    } else {
    }
    return
  }
  func.func @transform_0(%arg0: i32, %arg1: i32) -> (i32, i32, i32) {
    %c1_i32 = arith.constant 1 : i32
    %0 = arith.muli %arg0, %c1_i32 : i32
    %1 = arith.addi %0, %arg1 : i32
    %c0_i32 = arith.constant 0 : i32
    %c0_i32_0 = arith.constant 0 : i32
    %c0_i32_1 = arith.constant 0 : i32
    return %1, %c0_i32, %c0_i32_0 : i32, i32, i32
  }
  func.func @transform_1(%arg0: i32, %arg1: i32) -> (i32, i32) {
    %c1_i32 = arith.constant 1 : i32
    %0 = arith.muli %arg0, %c1_i32 : i32
    %1 = arith.addi %0, %arg1 : i32
    %c0_i32 = arith.constant 0 : i32
    %c0_i32_0 = arith.constant 0 : i32
    return %1, %c0_i32 : i32, i32
  }
  func.func @transform_2(%arg0: i32, %arg1: i32) -> (i32, i32) {
    %c0_i32 = arith.constant 0 : i32
    %c0_i32_0 = arith.constant 0 : i32
    %c0_i32_1 = arith.constant 0 : i32
    return %c0_i32, %c0_i32_0 : i32, i32
  }
  func.func @transform_3(%arg0: i32, %arg1: i32) -> (i32, i32) {
    %c0_i32 = arith.constant 0 : i32
    %c0_i32_0 = arith.constant 0 : i32
    %c0_i32_1 = arith.constant 0 : i32
    return %c0_i32, %c0_i32_0 : i32, i32
  }
  func.func @transform_4(%arg0: i32, %arg1: i32) -> (i32, i32) {
    %c0_i32 = arith.constant 0 : i32
    %c0_i32_0 = arith.constant 0 : i32
    %c0_i32_1 = arith.constant 0 : i32
    return %c0_i32, %c0_i32_0 : i32, i32
  }
  func.func @transform_5(%arg0: i32, %arg1: i32) -> (i32, i32, i32) {
    %c0_i32 = arith.constant 0 : i32
    %c0_i32_0 = arith.constant 0 : i32
    %c0_i32_1 = arith.constant 0 : i32
    return %arg0, %c0_i32, %c0_i32_0 : i32, i32, i32
  }
}

module attributes {stable_mosaic.version = 11 : i64} {
  func.func @_atomwise_kernel(%arg0: i32, %arg1: i32, %arg2: memref<1x1x64xi32, #tpu.memory_space<vmem>>, %arg3: memref<64x32xbf16, #tpu.memory_space<vmem>>, %arg4: memref<32x128xbf16, #tpu.memory_space<vmem>>, %arg5: memref<1x128xf32, #tpu.memory_space<vmem>>, %arg6: memref<128x1xf32, #tpu.memory_space<vmem>>, %arg7: memref<1x8x1xf32, #tpu.memory_space<vmem>>, %arg8: memref<8x128xf32, #tpu.memory_space<vmem>>) attributes {dimension_semantics = [#tpu.dimension_semantics<parallel>, #tpu.dimension_semantics<arbitrary>], iteration_bounds = array<i64: 1, 1>, scalar_prefetch = 0 : i64, scratch_operands = 1 : i64, tpu.core_type = #tpu.core_type<tc>, window_params = [{transform_indices = @transform_0, window_bounds = array<i64: 1, 1, 64>}, {transform_indices = @transform_1, window_bounds = array<i64: 64, 32>}, {pipeline_mode = #tpu.pipeline_mode<synchronous>, transform_indices = @transform_2, window_bounds = array<i64: 32, 128>}, {pipeline_mode = #tpu.pipeline_mode<synchronous>, transform_indices = @transform_3, window_bounds = array<i64: 1, 128>}, {pipeline_mode = #tpu.pipeline_mode<synchronous>, transform_indices = @transform_4, window_bounds = array<i64: 128, 1>}, {transform_indices = @transform_5, window_bounds = array<i64: 1, 8, 1>}]} {
    %c0_i32 = arith.constant 0 : i32
    %0 = arith.cmpi eq, %arg1, %c0_i32 : i32
    %1 = arith.extui %0 : i1 to i32
    %c0_i32_0 = arith.constant 0 : i32
    %2 = arith.cmpi ne, %1, %c0_i32_0 : i32
    scf.if %2 {
      %cst_17 = arith.constant 0.000000e+00 : f32
      %31 = vector.broadcast %cst_17 : f32 to vector<8x128xf32>
      %c0_18 = arith.constant 0 : index
      %c0_19 = arith.constant 0 : index
      %32 = vector.load %arg8[%c0_18, %c0_19] : memref<8x128xf32, #tpu.memory_space<vmem>>, vector<8x128xf32>
      tpu.vector_store %arg8[%c0_18, %c0_19], %31 {strides = array<i32>} : memref<8x128xf32, #tpu.memory_space<vmem>>, vector<8x128xf32>,
    } else {
    }
    %c0 = arith.constant 0 : index
    %c0_1 = arith.constant 0 : index
    %3 = vector.load %arg3[%c0, %c0_1] : memref<64x32xbf16, #tpu.memory_space<vmem>>, vector<64x32xbf16>
    %c0_2 = arith.constant 0 : index
    %c0_3 = arith.constant 0 : index
    %4 = vector.load %arg4[%c0_2, %c0_3] : memref<32x128xbf16, #tpu.memory_space<vmem>>, vector<32x128xbf16>
    %cst = arith.constant dense<0.000000e+00> : vector<64x128xf32>
    %5 = tpu.matmul %3, %4, %cst {dimension_numbers = #tpu.dot_dimension_numbers<[1], [0], [0], [1], [0, 0, 1, 1], [], []>} : vector<64x32xbf16>, vector<32x128xbf16>, vector<64x128xf32> -> vector<64x128xf32>
    %c0_4 = arith.constant 0 : index
    %c0_5 = arith.constant 0 : index
    %6 = vector.load %arg5[%c0_4, %c0_5] : memref<1x128xf32, #tpu.memory_space<vmem>>, vector<1x128xf32>
    %7 = vector.broadcast %6 : vector<1x128xf32> to vector<64x128xf32>
    %8 = arith.addf %5, %7 : vector<64x128xf32>
    %9 = arith.negf %8 : vector<64x128xf32>
    %10 = math.exp %9 : vector<64x128xf32>
    %cst_6 = arith.constant 1.000000e+00 : f32
    %11 = vector.broadcast %cst_6 : f32 to vector<64x128xf32>
    %12 = arith.addf %11, %10 : vector<64x128xf32>
    %13 = arith.divf %11, %12 : vector<64x128xf32>
    %14 = arith.mulf %8, %13 : vector<64x128xf32>
    %c0_7 = arith.constant 0 : index
    %c0_8 = arith.constant 0 : index
    %c0_9 = arith.constant 0 : index
    %15 = vector.load %arg2[%c0_7, %c0_8, %c0_9] : memref<1x1x64xi32, #tpu.memory_space<vmem>>, vector<1x1x64xi32>
    %16 = vector.shape_cast %15 : vector<1x1x64xi32> to vector<1x64xi32>
    %17 = tpu.iota {dimensions = array<i32: 0>} : vector<8x64xi32>
    %18 = vector.broadcast %16 : vector<1x64xi32> to vector<8x64xi32>
    %19 = arith.cmpi eq, %17, %18 : vector<8x64xi32>
    %20 = arith.extui %19 : vector<8x64xi1> to vector<8x64xi32>
    %21 = arith.sitofp %20 : vector<8x64xi32> to vector<8x64xf32>
    %22 = arith.truncf %21 : vector<8x64xf32> to vector<8x64xbf16>
    %c0_10 = arith.constant 0 : index
    %c0_11 = arith.constant 0 : index
    %23 = vector.load %arg8[%c0_10, %c0_11] : memref<8x128xf32, #tpu.memory_space<vmem>>, vector<8x128xf32>
    %24 = arith.truncf %14 : vector<64x128xf32> to vector<64x128xbf16>
    %cst_12 = arith.constant dense<0.000000e+00> : vector<8x128xf32>
    %25 = tpu.matmul %22, %24, %cst_12 {dimension_numbers = #tpu.dot_dimension_numbers<[1], [0], [0], [1], [0, 0, 1, 1], [], []>} : vector<8x64xbf16>, vector<64x128xbf16>, vector<8x128xf32> -> vector<8x128xf32>
    %26 = arith.addf %23, %25 : vector<8x128xf32>
    %c0_13 = arith.constant 0 : index
    %c0_14 = arith.constant 0 : index
    %27 = vector.load %arg8[%c0_13, %c0_14] : memref<8x128xf32, #tpu.memory_space<vmem>>, vector<8x128xf32>
    tpu.vector_store %arg8[%c0_13, %c0_14], %26 {strides = array<i32>} : memref<8x128xf32, #tpu.memory_space<vmem>>, vector<8x128xf32>,
    %c0_i32_15 = arith.constant 0 : i32
    %28 = arith.cmpi eq, %arg1, %c0_i32_15 : i32
    %29 = arith.extui %28 : i1 to i32
    %c0_i32_16 = arith.constant 0 : i32
    %30 = arith.cmpi ne, %29, %c0_i32_16 : i32
    scf.if %30 {
      %c0_17 = arith.constant 0 : index
      %c0_18 = arith.constant 0 : index
      %31 = vector.load %arg8[%c0_17, %c0_18] : memref<8x128xf32, #tpu.memory_space<vmem>>, vector<8x128xf32>
      %c0_19 = arith.constant 0 : index
      %c0_20 = arith.constant 0 : index
      %32 = vector.load %arg6[%c0_19, %c0_20] : memref<128x1xf32, #tpu.memory_space<vmem>>, vector<128x1xf32>
      %cst_21 = arith.constant dense<0.000000e+00> : vector<8x1xf32>
      %33 = tpu.matmul %31, %32, %cst_21 {dimension_numbers = #tpu.dot_dimension_numbers<[1], [0], [0], [1], [0, 0, 1, 1], [], []>} : vector<8x128xf32>, vector<128x1xf32>, vector<8x1xf32> -> vector<8x1xf32>
      %34 = vector.shape_cast %33 : vector<8x1xf32> to vector<1x8x1xf32>
      %c0_22 = arith.constant 0 : index
      %c0_23 = arith.constant 0 : index
      %c0_24 = arith.constant 0 : index
      %35 = vector.load %arg7[%c0_22, %c0_23, %c0_24] : memref<1x8x1xf32, #tpu.memory_space<vmem>>, vector<1x8x1xf32>
      tpu.vector_store %arg7[%c0_22, %c0_23, %c0_24], %34 {strides = array<i32>} : memref<1x8x1xf32, #tpu.memory_space<vmem>>, vector<1x8x1xf32>,
    } else {
    }
    return
  }
  func.func @transform_0(%arg0: i32, %arg1: i32) -> (i32, i32, i32) {
    %c1_i32 = arith.constant 1 : i32
    %0 = arith.muli %arg0, %c1_i32 : i32
    %1 = arith.addi %0, %arg1 : i32
    %c0_i32 = arith.constant 0 : i32
    %c0_i32_0 = arith.constant 0 : i32
    %c0_i32_1 = arith.constant 0 : i32
    return %1, %c0_i32, %c0_i32_0 : i32, i32, i32
  }
  func.func @transform_1(%arg0: i32, %arg1: i32) -> (i32, i32) {
    %c1_i32 = arith.constant 1 : i32
    %0 = arith.muli %arg0, %c1_i32 : i32
    %1 = arith.addi %0, %arg1 : i32
    %c0_i32 = arith.constant 0 : i32
    %c0_i32_0 = arith.constant 0 : i32
    return %1, %c0_i32 : i32, i32
  }
  func.func @transform_2(%arg0: i32, %arg1: i32) -> (i32, i32) {
    %c0_i32 = arith.constant 0 : i32
    %c0_i32_0 = arith.constant 0 : i32
    %c0_i32_1 = arith.constant 0 : i32
    return %c0_i32, %c0_i32_0 : i32, i32
  }
  func.func @transform_3(%arg0: i32, %arg1: i32) -> (i32, i32) {
    %c0_i32 = arith.constant 0 : i32
    %c0_i32_0 = arith.constant 0 : i32
    %c0_i32_1 = arith.constant 0 : i32
    return %c0_i32, %c0_i32_0 : i32, i32
  }
  func.func @transform_4(%arg0: i32, %arg1: i32) -> (i32, i32) {
    %c0_i32 = arith.constant 0 : i32
    %c0_i32_0 = arith.constant 0 : i32
    %c0_i32_1 = arith.constant 0 : i32
    return %c0_i32, %c0_i32_0 : i32, i32
  }
  func.func @transform_5(%arg0: i32, %arg1: i32) -> (i32, i32, i32) {
    %c0_i32 = arith.constant 0 : i32
    %c0_i32_0 = arith.constant 0 : i32
    %c0_i32_1 = arith.constant 0 : i32
    return %arg0, %c0_i32, %c0_i32_0 : i32, i32, i32
  }
}

</mosaic_0001>

<bundles_post_ra>
// kernel: tpu_custom_call.1
= control target key start
LH: loop header
LB: loop body
LE: loop exit
PB: predicated region body
PF: predicated region fallthrough
CT: control target
= control target key end

     0   :  { %vm110_vm0 = vcmask 261120   ;;  %s843_s2 = inlined_call_operand.vmem [shape: bf16[32,128], index: 2, kind: input, shape index: {}]   ;;  %s844_s3 = inlined_call_operand.vmem [shape: f32[1,128], index: 3, kind: input, shape index: {}]   ;;  %s845_s1 = inlined_call_operand.vmem [shape: bf16[64,32], index: 1, kind: input, shape index: {}]   ;;  %s846_s0 = inlined_call_operand.vmem [shape: s32[1,1,64], index: 0, kind: input, shape index: {}]   ;;  %s847_s4 = inlined_call_operand.vmem [shape: f32[128,1], index: 4, kind: input, shape index: {}]   ;;  %s848_s5 = inlined_call_operand.vmem [shape: f32[1,8,1], index: 5, kind: output, shape index: {}]  }
   0x1   :  { %v442_v0 = vld [vmem:[%s843_s2 + $0x8] sm:$0xff]  ;;  %v441_v1 = vld [vmem:[%s843_s2] sm:$0xff]  ;;  %v439_v3 = vld [vmem:[%s845_s1 + $0x10] sm:$0xff] }
   0x2   :  { %129 = vmatpush.bf16.msra.mxu0 %v442_v0  ;;  %443 = vmatpush.bf16.msra.mxu3 %v442_v0  ;;  %v437_v2 = vld [vmem:[%s845_s1] sm:$0xff]  ;;  %v438_v4 = vld [vmem:[%s845_s1 + $0x8] sm:$0xff]  ;;  %v440_v5 = vld [vmem:[%s845_s1 + $0x18] sm:$0xff] }
   0x3   :  { %v446_v7 = vld [vmem:[%s844_s3] ss:$0 sm:$0xff] }
   0x6   :  { %130 = vmatpush.bf16.msra.mxu0 %v441_v1  ;;  %444 = vmatpush.bf16.msra.mxu3 %v441_v1 }
   0x9   :  { %423 = vmatmul.msk.bf16.vlgmr.msra.gmra.mxu0 %vm110_vm0, %v437_v2  ;;  %425 = vmatmul.msk.bf16.vlgmr.msra.gmra.mxu3 %vm110_vm0, %v439_v3 }
  0x19   :  { %424 = vmatmul.msk.bf16.gmra.mxu0 %vm110_vm0, %v438_v4  ;;  %426 = vmatmul.msk.bf16.gmra.mxu3 %vm110_vm0, %v440_v5 }
  0x86   :  { %v132_v6 = vpop.f32.mrf.mxu0 }
  0x87   :  { %v532_v9 = vadd.f32 %v446_v7, %v132_v6 }
  0x89   :  { %v427_v11 = vmul.f32 -1.442695, %v532_v9 }
  0x8b   :  { %448 = vpow2.f32 %v427_v11 }
  0x8c   :  { %v142_v8 = vpop.f32.mrf.mxu3 }
  0x8d   :  { %v535_v12 = vadd.f32 %v446_v7, %v142_v8 }
  0x8e   :  { %v134_v10 = vpop.f32.mrf.mxu0 }
  0x8f   :  { %v537_v14 = vadd.f32 %v446_v7, %v134_v10  ;;  %v431_v17 = vmul.f32 -1.442695, %v535_v12 }
  0x91   :  { %v428_v20 = vmul.f32 -1.442695, %v537_v14  ;;  %v449_v21 = vpop.eup %448 }
  0x92   :  { %v547_v24 = vadd.f32 1.0, %v449_v21 }
  0x94   :  { %v144_v13 = vpop.f32.mrf.mxu3  ;;  %v193_v60 = vand.u32 2147483647, %v547_v24  ;;  %v195_v62 = vand.u32 2147483648, %v547_v24  ;;  %vm189_vm7 = vweird.f32 %v547_v24 }
  0x95   :  { %v539_v15 = vadd.f32 %v446_v7, %v144_v13 }
  0x96   :  { %v137_v16 = vpop.f32.mrf.mxu0 }
  0x97   :  { %v432_v18 = vmul.f32 -1.442695, %v539_v15  ;;  %v543_v19 = vadd.f32 %v446_v7, %v137_v16 }
  0x99   :  { %450 = vpow2.f32 %v432_v18  ;;  %v429_v22 = vmul.f32 -1.442695, %v543_v19  ;;  %v363_v18 = vld [vmem:[%s847_s4 + $0x78] sm:$0xff] }
  0x9a   :  { %452 = vpow2.f32 %v431_v17  ;;  %364 = vmatpush.msra.mxu2 %v363_v18 }
  0x9b   :  { %454 = vpow2.f32 %v428_v20  ;;  %v362_v20 = vld [vmem:[%s847_s4 + $0x70] sm:$0xff] }
  0x9c   :  { %v147_v23 = vpop.f32.mrf.mxu3  ;;  %456 = vpow2.f32 %v429_v22  ;;  %365 = vmatpush.msra.mxu2 %v362_v20  ;;  %v357_v20 = vld [vmem:[%s847_s4 + $0x48] sm:$0xff] }
  0x9d   :  { %v549_v25 = vadd.f32 %v446_v7, %v147_v23  ;;  %458 = vrcp.f32 %v547_v24 }
  0x9e   :  { %v139_v26 = vpop.f32.mrf.mxu0 }
  0x9f   :  { %v451_v27 = vpop.eup %450  ;;  %v551_v28 = vadd.f32 %v446_v7, %v139_v26  ;;  %v433_v29 = vmul.f32 -1.442695, %v549_v25 }
  0xa0   :  { %v453_v30 = vpop.eup %452  ;;  %v555_v31 = vadd.f32 1.0, %v451_v27 }
  0xa1   :  { %v455_v32 = vpop.eup %454  ;;  %460 = vpow2.f32 %v433_v29  ;;  %v430_v33 = vmul.f32 -1.442695, %v551_v28  ;;  %v558_v34 = vadd.f32 1.0, %v453_v30 }
  0xa2   :  { %v457_v36 = vpop.eup %456  ;;  %v560_v37 = vadd.f32 1.0, %v455_v32  ;;  %462 = vrcp.f32 %v555_v31  ;;  %v270_v0 = vand.u32 2147483648, %v555_v31  ;;  %v268_v8 = vand.u32 2147483647, %v555_v31  ;;  %v361_v32 = vld [vmem:[%s847_s4 + $0x68] sm:$0xff] }
  0xa3   :  { %464 = vpow2.f32 %v430_v33  ;;  %v565_v39 = vpop.eup %458  ;;  %v568_v41 = vadd.f32 1.0, %v457_v36  ;;  %v255_v55 = vand.u32 2147483648, %v558_v34  ;;  %v253_v3 = vand.u32 2147483647, %v558_v34  ;;  %366 = vmatpush.msra.mxu2 %v361_v32 }
  0xa4   :  { %v149_v35 = vpop.f32.mrf.mxu3  ;;  %466 = vrcp.f32 %v558_v34  ;;  %v185_v45 = vmul.f32 %v565_v39, %v547_v24  ;;  %vm249_vm1 = vweird.f32 %v558_v34  ;;  %v210_v16 = vand.u32 2147483648, %v560_v37 }
  0xa5   :  { %v563_v38 = vadd.f32 %v446_v7, %v149_v35  ;;  %468 = vrcp.f32 %v560_v37  ;;  %v608_v4 = vor.u32 1.1754944e-38, %v255_v55  ;;  %v208_v7 = vand.u32 2147483647, %v560_v37 }
  0xa6   :  { %v186_v50 = vsub.f32 1.0, %v185_v45  ;;  %vm264_vm3 = vweird.f32 %v555_v31  ;;  %v634_v22 = vor.u32 1.1754944e-38, %v270_v0  ;;  %vm219_vm4 = vweird.f32 %v568_v41 }
  0xa7   :  { %v461_v40 = vpop.eup %460  ;;  %v434_v42 = vmul.f32 -1.442695, %v563_v38  ;;  %v223_v30 = vand.u32 2147483647, %v568_v41  ;;  %vm643_vm5 = vcmp.eq.f32.partialorder %v268_v8, 8.507059e+37  ;;  %v225_v35 = vand.u32 2147483648, %v568_v41 }
  0xa8   :  { %v572_v43 = vadd.f32 1.0, %v461_v40  ;;  %v574_v44 = vpop.eup %462  ;;  %v187_v59 = vmul.f32 %v565_v39, %v186_v50  ;;  %vm190_vm8 = vweird.f32 %v565_v39  ;;  %v360_v50 = vld [vmem:[%s847_s4 + $0x60] sm:$0xff]  ;;  %vm662_vm10 = vcmp.eq.f32.partialorder %v253_v3, 8.507059e+37  ;;  %v358_v8 = vld [vmem:[%s847_s4 + $0x50] sm:$0xff] }
  0xa9   :  { %470 = vpow2.f32 %v434_v42  ;;  %v465_v46 = vpop.eup %464  ;;  %v260_v51 = vmul.f32 %v574_v44, %v555_v31  ;;  %vm265_vm9 = vweird.f32 %v574_v44  ;;  %vm204_vm11 = vweird.f32 %v560_v37  ;;  %367 = vmatpush.msra.mxu2 %v360_v50  ;;  %v355_v50 = vld [vmem:[%s847_s4 + $0x38] sm:$0xff] }
  0xaa   :  { %472 = vrcp.f32 %v572_v43  ;;  %v580_v47 = vpop.eup %466  ;;  %v582_v48 = vadd.f32 1.0, %v465_v46  ;;  %v620_v13 = vadd.f32 %v565_v39, %v187_v59  ;;  %v283_v45 = vand.u32 2147483647, %v572_v43  ;;  %vm686_vm15 = vmor %vm264_vm3, %vm265_vm9 }
  0xab   :  { %474 = vrcp.f32 %v568_v41  ;;  %v584_v49 = vpop.eup %468  ;;  %v245_v53 = vmul.f32 %v580_v47, %v558_v34  ;;  %v261_v61 = vsub.f32 1.0, %v260_v51  ;;  %vm250_vm2 = vweird.f32 %v580_v47 }
  0xac   :  { %476 = vrcp.f32 %v582_v48  ;;  %v200_v5 = vmul.f32 %v584_v49, %v560_v37  ;;  %v285_v46 = vand.u32 2147483648, %v572_v43  ;;  %vm279_vm12 = vweird.f32 %v572_v43  ;;  %vm707_vm9 = vmor %vm249_vm1, %vm250_vm2  ;;  %v351_v37 = vld [vmem:[%s847_s4 + $0x18] sm:$0xff] }
  0xad   :  { %v246_v63 = vsub.f32 1.0, %v245_v53  ;;  %v262_v17 = vmul.f32 %v574_v44, %v261_v61  ;;  %vm234_vm3 = vweird.f32 %v582_v48  ;;  %v352_v61 = vld [vmem:[%s847_s4 + $0x20] sm:$0xff] }
  0xae   :  { %v201_v27 = vsub.f32 1.0, %v200_v5  ;;  %v286_v31 = vor.u32 1.1754944e-38, %v285_v46  ;;  %v313_v46 = vlaneseq }
  0xaf   :  { %v471_v52 = vpop.eup %470  ;;  %v247_v21 = vmul.f32 %v580_v47, %v246_v63  ;;  %v263_v42 = vadd.f32 %v574_v44, %v262_v17  ;;  %v240_v17 = vand.u32 2147483648, %v582_v48 }
  0xb0   :  { %v591_v54 = vpop.eup %472  ;;  %v594_v56 = vadd.f32 1.0, %v471_v52 }
  0xb1   :  { %v596_v57 = vpop.eup %474  ;;  %v275_v58 = vmul.f32 %v591_v54, %v572_v43  ;;  %vm280_vm6 = vweird.f32 %v591_v54  ;;  %v248_v51 = vadd.f32 %v580_v47, %v247_v21  ;;  %v359_v43 = vld [vmem:[%s847_s4 + $0x58] sm:$0xff] }
  0xb2   :  { %478 = vrcp.f32 %v594_v56  ;;  %v605_v2 = vpop.eup %476  ;;  %v215_v6 = vmul.f32 %v596_v57, %v568_v41  ;;  %vm220_vm13 = vweird.f32 %v596_v57  ;;  %vm674_vm14 = vmor %vm279_vm12, %vm280_vm6  ;;  %v300_v63 = vand.u32 2147483648, %v594_v56  ;;  %368 = vmatpush.msra.mxu2 %v359_v43 }
  0xb3   :  { %v276_v1 = vsub.f32 1.0, %v275_v58  ;;  %v230_v10 = vmul.f32 %v605_v2, %v582_v48  ;;  %v202_v58 = vmul.f32 %v584_v49, %v201_v27  ;;  %v298_v5 = vand.u32 2147483647, %v594_v56  ;;  %vm729_vm2 = vmor %vm219_vm4, %vm220_vm13 }
  0xb4   :  { %v216_v29 = vsub.f32 1.0, %v215_v6  ;;  %v267_v6 = vsel %vm686_vm15, %v574_v44, %v263_v42  ;;  %vm284_vm6 = vcmp.eq.f32.partialorder %v283_v45, 8.507059e+37  ;;  %vm235_vm12 = vweird.f32 %v605_v2  ;;  %369 = vmatpush.msra.mxu2 %v358_v8 }
  0xb5   :  { %v277_v11 = vmul.f32 %v591_v54, %v276_v1  ;;  %v231_v23 = vsub.f32 1.0, %v230_v10  ;;  %v301_v18 = vor.u32 1.1754944e-38, %v300_v63  ;;  %vm299_vm15 = vcmp.eq.f32.partialorder %v298_v5, 8.507059e+37  ;;  %vm747_vm4 = vmor %vm234_vm3, %vm235_vm12 }
  0xb6   :  { %v217_v59 = vmul.f32 %v596_v57, %v216_v29  ;;  %v272_v27 = vsel %vm643_vm5, %v634_v22, %v267_v6  ;;  %v203_v33 = vadd.f32 %v584_v49, %v202_v58  ;;  %370 = vmatpush.msra.mxu2 %v357_v20  ;;  %v226_v42 = vor.u32 1.1754944e-38, %v225_v35  ;;  %vm772_vm5 = vmor %vm189_vm7, %vm190_vm8 }
  0xb7   :  { %v278_v36 = vadd.f32 %v591_v54, %v277_v11  ;;  %v232_v53 = vmul.f32 %v605_v2, %v231_v23  ;;  %v252_v11 = vsel %vm707_vm9, %v580_v47, %v248_v51  ;;  %v238_v47 = vand.u32 2147483647, %v582_v48 }
  0xb8   :  { %v636_v26 = vpop.eup %478  ;;  %v218_v21 = vadd.f32 %v596_v57, %v217_v59  ;;  %v257_v48 = vsel %vm662_vm10, %v608_v4, %v252_v11  ;;  %v241_v45 = vor.u32 1.1754944e-38, %v240_v17  ;;  %vm793_vm7 = vcmp.eq.f32.partialorder %v193_v60, 8.507059e+37 }
  0xb9   :  { %v290_v40 = vmul.f32 %v636_v26, %v594_v56  ;;  %v282_v1 = vsel %vm674_vm14, %v591_v54, %v278_v36  ;;  %vm295_vm0 = vweird.f32 %v636_v26  ;;  %v233_v10 = vadd.f32 %v605_v2, %v232_v53  ;;  %v356_v36 = vld [vmem:[%s847_s4 + $0x40] sm:$0xff] }
  0xba   :  { %vm294_vm14 = vweird.f32 %v594_v56  ;;  %v287_v34 = vsel %vm284_vm6, %v286_v31, %v282_v1  ;;  %vm739_vm6 = vcmp.eq.f32.partialorder %v223_v30, 8.507059e+37  ;;  %v222_v41 = vsel %vm729_vm2, %v596_v57, %v218_v21  ;;  %371 = vmatpush.msra.mxu2 %v356_v36  ;;  %v349_v1 = vld [vmem:[%s847_s4 + $0x8] sm:$0xff] }
  0xbb   :  { %v291_v55 = vsub.f32 1.0, %v290_v40  ;;  %vm296_vm1 = vmor %vm294_vm14, %vm295_vm0  ;;  %vm205_vm0 = vweird.f32 %v584_v49  ;;  %v237_v22 = vsel %vm747_vm4, %v605_v2, %v233_v10  ;;  %v310_v30 = vmul.f32 %v287_v34, %v549_v25 }
  0xbc   :  { %vm239_vm10 = vcmp.eq.f32.partialorder %v238_v47, 8.507059e+37  ;;  %vm784_vm13 = vmor %vm204_vm11, %vm205_vm0  ;;  %v308_v51 = vmul.f32 %v257_v48, %v535_v12  ;;  %372 = vmatpush.msra.mxu2 %v355_v50  ;;  %v196_v53 = vor.u32 1.1754944e-38, %v195_v62  ;;  %v227_v60 = vsel %vm739_vm6, %v226_v42, %v222_v41  ;;  %v447_v12 = vld [vmem:[%s846_s0] ss:$0 sm:$0xff] }
  0xbd   :  { %v292_v3 = vmul.f32 %v636_v26, %v291_v55  ;;  %v242_v35 = vsel %vm239_vm10, %v241_v45, %v237_v22  ;;  %v207_v52 = vsel %vm784_vm13, %v584_v49, %v203_v33  ;;  %v211_v55 = vor.u32 1.1754944e-38, %v210_v16  ;;  %v353_v49 = vld [vmem:[%s847_s4 + $0x28] sm:$0xff] }
  0xbe   :  { %v314_v58 = vshrl.u32 %v313_v46, 7  ;;  %v192_v24 = vsel %vm772_vm5, %v565_v39, %v620_v13  ;;  %vm209_vm8 = vcmp.eq.f32.partialorder %v208_v7, 8.507059e+37  ;;  %v307_v62 = vmul.f32 %v242_v35, %v551_v28  ;;  %v350_v7 = vld [vmem:[%s847_s4 + $0x10] sm:$0xff] }
  0xbf   :  { %v293_v44 = vadd.f32 %v636_v26, %v292_v3  ;;  %v212_v59 = vsel %vm209_vm8, %v211_v55, %v207_v52  ;;  %v306_v63 = vmul.f32 %v227_v60, %v543_v19  ;;  %v197_v43 = vsel %vm793_vm7, %v196_v53, %v192_v24 }
  0xc0   :  { %vm316_vm11 = vcmp.eq.s32.totalorder %v314_v58, %v447_v12  ;;  %v305_v28 = vmul.f32 %v212_v59, %v537_v14  ;;  %v304_v19 = vmul.f32 %v197_v43, %v532_v9  ;;  %v480_v13 = vmov 0.0   ;;  %v348_v14 = vld [vmem:[%s847_s4] sm:$0xff] }
  0xc1   :  { %v297_v23 = vsel %vm296_vm1, %v636_v26, %v293_v44  ;;  %v322_v39 = vpack.c.bf16 %v307_v62, %v306_v63  ;;  %v435_v0 = vsel %vm316_vm11, 1.0, %v480_v13  ;;  %vm325_vm3 = vcmask 523264  }
  0xc2   :  { %v302_v26 = vsel %vm299_vm15, %v301_v18, %v297_v23  ;;  %v321_v3 = vpack.c.bf16 %v305_v28, %v304_v19  ;;  %v319_v5 = vpack.c.bf16 %v435_v0, %v435_v0  ;;  %vm384_vm9 = vcmask 7168  }
  0xc3   :  { %v311_v40 = vmul.f32 %v302_v26, %v563_v38  ;;  %v309_v38 = vmul.f32 %v272_v27, %v539_v15  ;;  %v354_v15 = vld [vmem:[%s847_s4 + $0x30] sm:$0xff] }
  0xc4   :  { %373 = vmatpush.msra.mxu2 %v354_v15 }
  0xc5   :  { %v324_v2 = vpack.c.bf16 %v311_v40, %v310_v30  ;;  %v323_v16 = vpack.c.bf16 %v309_v38, %v308_v51 }
  0xc6   :  { %374 = vmatpush.msra.mxu2 %v353_v49 }
  0xc7   :  { %333 = vmatpush.bf16.msra.mxu1 %v324_v2 }
  0xc8   :  { %375 = vmatpush.msra.mxu2 %v352_v61 }
  0xca   :  { %376 = vmatpush.msra.mxu2 %v351_v37 }
  0xcb   :  { %334 = vmatpush.bf16.msra.mxu1 %v323_v16 }
  0xcc   :  { %377 = vmatpush.msra.mxu2 %v350_v7 }
  0xce   :  { %378 = vmatpush.msra.mxu2 %v349_v1 }
  0xcf   :  { %335 = vmatpush.bf16.msra.mxu1 %v322_v39 }
  0xd0   :  { %379 = vmatpush.msra.mxu2 %v348_v14 }
  0xd3   :  { %336 = vmatpush.bf16.msra.mxu1 %v321_v3 }
  0xd6   :  { %436 = vmatmul.msk.bf16.vlgmr.msra.gmra.mxu1 %vm325_vm3, %v319_v5 }
 0x153   :  { %v338_v9 = vpop.f32.mrf.mxu1 }
 0x154   :  { %380 = vmatmul.f32.vlgmr.msra.gmra.mxu2 %v338_v9 }
 0x15b   :  { %v340_v6 = vpop.f32.mrf.mxu1 }
 0x1d7   :  { %v381_v31 = vpop.f32.mrf.mxu2 }
 0x1d8   :  { %385 = vst.msk [vmem:[%s848_s5] sm:$0xff] %vm384_vm9, %v381_v31 }

// kernel: tpu_custom_call.1
= control target key start
LH: loop header
LB: loop body
LE: loop exit
PB: predicated region body
PF: predicated region fallthrough
CT: control target
= control target key end

     0   :  { %vm110_vm0 = vcmask 261120   ;;  %s843_s2 = inlined_call_operand.vmem [shape: bf16[32,128], index: 2, kind: input, shape index: {}]   ;;  %s844_s3 = inlined_call_operand.vmem [shape: f32[1,128], index: 3, kind: input, shape index: {}]   ;;  %s845_s1 = inlined_call_operand.vmem [shape: bf16[64,32], index: 1, kind: input, shape index: {}]   ;;  %s846_s0 = inlined_call_operand.vmem [shape: s32[1,1,64], index: 0, kind: input, shape index: {}]   ;;  %s847_s4 = inlined_call_operand.vmem [shape: f32[128,1], index: 4, kind: input, shape index: {}]   ;;  %s848_s5 = inlined_call_operand.vmem [shape: f32[1,8,1], index: 5, kind: output, shape index: {}]  }
   0x1   :  { %v442_v0 = vld [vmem:[%s843_s2 + $0x8] sm:$0xff]  ;;  %v441_v1 = vld [vmem:[%s843_s2] sm:$0xff]  ;;  %v439_v3 = vld [vmem:[%s845_s1 + $0x10] sm:$0xff] }
   0x2   :  { %129 = vmatpush.bf16.msra.mxu0 %v442_v0  ;;  %443 = vmatpush.bf16.msra.mxu3 %v442_v0  ;;  %v437_v2 = vld [vmem:[%s845_s1] sm:$0xff]  ;;  %v438_v4 = vld [vmem:[%s845_s1 + $0x8] sm:$0xff]  ;;  %v440_v5 = vld [vmem:[%s845_s1 + $0x18] sm:$0xff] }
   0x3   :  { %v446_v7 = vld [vmem:[%s844_s3] ss:$0 sm:$0xff] }
   0x6   :  { %130 = vmatpush.bf16.msra.mxu0 %v441_v1  ;;  %444 = vmatpush.bf16.msra.mxu3 %v441_v1 }
   0x9   :  { %423 = vmatmul.msk.bf16.vlgmr.msra.gmra.mxu0 %vm110_vm0, %v437_v2  ;;  %425 = vmatmul.msk.bf16.vlgmr.msra.gmra.mxu3 %vm110_vm0, %v439_v3 }
  0x19   :  { %424 = vmatmul.msk.bf16.gmra.mxu0 %vm110_vm0, %v438_v4  ;;  %426 = vmatmul.msk.bf16.gmra.mxu3 %vm110_vm0, %v440_v5 }
  0x86   :  { %v132_v6 = vpop.f32.mrf.mxu0 }
  0x87   :  { %v532_v9 = vadd.f32 %v446_v7, %v132_v6 }
  0x89   :  { %v427_v11 = vmul.f32 -1.442695, %v532_v9 }
  0x8b   :  { %448 = vpow2.f32 %v427_v11 }
  0x8c   :  { %v142_v8 = vpop.f32.mrf.mxu3 }
  0x8d   :  { %v535_v12 = vadd.f32 %v446_v7, %v142_v8 }
  0x8e   :  { %v134_v10 = vpop.f32.mrf.mxu0 }
  0x8f   :  { %v537_v14 = vadd.f32 %v446_v7, %v134_v10  ;;  %v431_v17 = vmul.f32 -1.442695, %v535_v12 }
  0x91   :  { %v428_v20 = vmul.f32 -1.442695, %v537_v14  ;;  %v449_v21 = vpop.eup %448 }
  0x92   :  { %v547_v24 = vadd.f32 1.0, %v449_v21 }
  0x94   :  { %v144_v13 = vpop.f32.mrf.mxu3  ;;  %v193_v60 = vand.u32 2147483647, %v547_v24  ;;  %v195_v62 = vand.u32 2147483648, %v547_v24  ;;  %vm189_vm7 = vweird.f32 %v547_v24 }
  0x95   :  { %v539_v15 = vadd.f32 %v446_v7, %v144_v13 }
  0x96   :  { %v137_v16 = vpop.f32.mrf.mxu0 }
  0x97   :  { %v432_v18 = vmul.f32 -1.442695, %v539_v15  ;;  %v543_v19 = vadd.f32 %v446_v7, %v137_v16 }
  0x99   :  { %450 = vpow2.f32 %v432_v18  ;;  %v429_v22 = vmul.f32 -1.442695, %v543_v19  ;;  %v363_v18 = vld [vmem:[%s847_s4 + $0x78] sm:$0xff] }
  0x9a   :  { %452 = vpow2.f32 %v431_v17  ;;  %364 = vmatpush.msra.mxu2 %v363_v18 }
  0x9b   :  { %454 = vpow2.f32 %v428_v20  ;;  %v362_v20 = vld [vmem:[%s847_s4 + $0x70] sm:$0xff] }
  0x9c   :  { %v147_v23 = vpop.f32.mrf.mxu3  ;;  %456 = vpow2.f32 %v429_v22  ;;  %365 = vmatpush.msra.mxu2 %v362_v20  ;;  %v357_v20 = vld [vmem:[%s847_s4 + $0x48] sm:$0xff] }
  0x9d   :  { %v549_v25 = vadd.f32 %v446_v7, %v147_v23  ;;  %458 = vrcp.f32 %v547_v24 }
  0x9e   :  { %v139_v26 = vpop.f32.mrf.mxu0 }
  0x9f   :  { %v451_v27 = vpop.eup %450  ;;  %v551_v28 = vadd.f32 %v446_v7, %v139_v26  ;;  %v433_v29 = vmul.f32 -1.442695, %v549_v25 }
  0xa0   :  { %v453_v30 = vpop.eup %452  ;;  %v555_v31 = vadd.f32 1.0, %v451_v27 }
  0xa1   :  { %v455_v32 = vpop.eup %454  ;;  %460 = vpow2.f32 %v433_v29  ;;  %v430_v33 = vmul.f32 -1.442695, %v551_v28  ;;  %v558_v34 = vadd.f32 1.0, %v453_v30 }
  0xa2   :  { %v457_v36 = vpop.eup %456  ;;  %v560_v37 = vadd.f32 1.0, %v455_v32  ;;  %462 = vrcp.f32 %v555_v31  ;;  %v270_v0 = vand.u32 2147483648, %v555_v31  ;;  %v268_v8 = vand.u32 2147483647, %v555_v31  ;;  %v361_v32 = vld [vmem:[%s847_s4 + $0x68] sm:$0xff] }
  0xa3   :  { %464 = vpow2.f32 %v430_v33  ;;  %v565_v39 = vpop.eup %458  ;;  %v568_v41 = vadd.f32 1.0, %v457_v36  ;;  %v255_v55 = vand.u32 2147483648, %v558_v34  ;;  %v253_v3 = vand.u32 2147483647, %v558_v34  ;;  %366 = vmatpush.msra.mxu2 %v361_v32 }
  0xa4   :  { %v149_v35 = vpop.f32.mrf.mxu3  ;;  %466 = vrcp.f32 %v558_v34  ;;  %v185_v45 = vmul.f32 %v565_v39, %v547_v24  ;;  %vm249_vm1 = vweird.f32 %v558_v34  ;;  %v210_v16 = vand.u32 2147483648, %v560_v37 }
  0xa5   :  { %v563_v38 = vadd.f32 %v446_v7, %v149_v35  ;;  %468 = vrcp.f32 %v560_v37  ;;  %v608_v4 = vor.u32 1.1754944e-38, %v255_v55  ;;  %v208_v7 = vand.u32 2147483647, %v560_v37 }
  0xa6   :  { %v186_v50 = vsub.f32 1.0, %v185_v45  ;;  %vm264_vm3 = vweird.f32 %v555_v31  ;;  %v634_v22 = vor.u32 1.1754944e-38, %v270_v0  ;;  %vm219_vm4 = vweird.f32 %v568_v41 }
  0xa7   :  { %v461_v40 = vpop.eup %460  ;;  %v434_v42 = vmul.f32 -1.442695, %v563_v38  ;;  %v223_v30 = vand.u32 2147483647, %v568_v41  ;;  %vm643_vm5 = vcmp.eq.f32.partialorder %v268_v8, 8.507059e+37  ;;  %v225_v35 = vand.u32 2147483648, %v568_v41 }
  0xa8   :  { %v572_v43 = vadd.f32 1.0, %v461_v40  ;;  %v574_v44 = vpop.eup %462  ;;  %v187_v59 = vmul.f32 %v565_v39, %v186_v50  ;;  %vm190_vm8 = vweird.f32 %v565_v39  ;;  %v360_v50 = vld [vmem:[%s847_s4 + $0x60] sm:$0xff]  ;;  %vm662_vm10 = vcmp.eq.f32.partialorder %v253_v3, 8.507059e+37  ;;  %v358_v8 = vld [vmem:[%s847_s4 + $0x50] sm:$0xff] }
  0xa9   :  { %470 = vpow2.f32 %v434_v42  ;;  %v465_v46 = vpop.eup %464  ;;  %v260_v51 = vmul.f32 %v574_v44, %v555_v31  ;;  %vm265_vm9 = vweird.f32 %v574_v44  ;;  %vm204_vm11 = vweird.f32 %v560_v37  ;;  %367 = vmatpush.msra.mxu2 %v360_v50  ;;  %v355_v50 = vld [vmem:[%s847_s4 + $0x38] sm:$0xff] }
  0xaa   :  { %472 = vrcp.f32 %v572_v43  ;;  %v580_v47 = vpop.eup %466  ;;  %v582_v48 = vadd.f32 1.0, %v465_v46  ;;  %v620_v13 = vadd.f32 %v565_v39, %v187_v59  ;;  %v283_v45 = vand.u32 2147483647, %v572_v43  ;;  %vm686_vm15 = vmor %vm264_vm3, %vm265_vm9 }
  0xab   :  { %474 = vrcp.f32 %v568_v41  ;;  %v584_v49 = vpop.eup %468  ;;  %v245_v53 = vmul.f32 %v580_v47, %v558_v34  ;;  %v261_v61 = vsub.f32 1.0, %v260_v51  ;;  %vm250_vm2 = vweird.f32 %v580_v47 }
  0xac   :  { %476 = vrcp.f32 %v582_v48  ;;  %v200_v5 = vmul.f32 %v584_v49, %v560_v37  ;;  %v285_v46 = vand.u32 2147483648, %v572_v43  ;;  %vm279_vm12 = vweird.f32 %v572_v43  ;;  %vm707_vm9 = vmor %vm249_vm1, %vm250_vm2  ;;  %v351_v37 = vld [vmem:[%s847_s4 + $0x18] sm:$0xff] }
  0xad   :  { %v246_v63 = vsub.f32 1.0, %v245_v53  ;;  %v262_v17 = vmul.f32 %v574_v44, %v261_v61  ;;  %vm234_vm3 = vweird.f32 %v582_v48  ;;  %v352_v61 = vld [vmem:[%s847_s4 + $0x20] sm:$0xff] }
  0xae   :  { %v201_v27 = vsub.f32 1.0, %v200_v5  ;;  %v286_v31 = vor.u32 1.1754944e-38, %v285_v46  ;;  %v313_v46 = vlaneseq }
  0xaf   :  { %v471_v52 = vpop.eup %470  ;;  %v247_v21 = vmul.f32 %v580_v47, %v246_v63  ;;  %v263_v42 = vadd.f32 %v574_v44, %v262_v17  ;;  %v240_v17 = vand.u32 2147483648, %v582_v48 }
  0xb0   :  { %v591_v54 = vpop.eup %472  ;;  %v594_v56 = vadd.f32 1.0, %v471_v52 }
  0xb1   :  { %v596_v57 = vpop.eup %474  ;;  %v275_v58 = vmul.f32 %v591_v54, %v572_v43  ;;  %vm280_vm6 = vweird.f32 %v591_v54  ;;  %v248_v51 = vadd.f32 %v580_v47, %v247_v21  ;;  %v359_v43 = vld [vmem:[%s847_s4 + $0x58] sm:$0xff] }
  0xb2   :  { %478 = vrcp.f32 %v594_v56  ;;  %v605_v2 = vpop.eup %476  ;;  %v215_v6 = vmul.f32 %v596_v57, %v568_v41  ;;  %vm220_vm13 = vweird.f32 %v596_v57  ;;  %vm674_vm14 = vmor %vm279_vm12, %vm280_vm6  ;;  %v300_v63 = vand.u32 2147483648, %v594_v56  ;;  %368 = vmatpush.msra.mxu2 %v359_v43 }
  0xb3   :  { %v276_v1 = vsub.f32 1.0, %v275_v58  ;;  %v230_v10 = vmul.f32 %v605_v2, %v582_v48  ;;  %v202_v58 = vmul.f32 %v584_v49, %v201_v27  ;;  %v298_v5 = vand.u32 2147483647, %v594_v56  ;;  %vm729_vm2 = vmor %vm219_vm4, %vm220_vm13 }
  0xb4   :  { %v216_v29 = vsub.f32 1.0, %v215_v6  ;;  %v267_v6 = vsel %vm686_vm15, %v574_v44, %v263_v42  ;;  %vm284_vm6 = vcmp.eq.f32.partialorder %v283_v45, 8.507059e+37  ;;  %vm235_vm12 = vweird.f32 %v605_v2  ;;  %369 = vmatpush.msra.mxu2 %v358_v8 }
  0xb5   :  { %v277_v11 = vmul.f32 %v591_v54, %v276_v1  ;;  %v231_v23 = vsub.f32 1.0, %v230_v10  ;;  %v301_v18 = vor.u32 1.1754944e-38, %v300_v63  ;;  %vm299_vm15 = vcmp.eq.f32.partialorder %v298_v5, 8.507059e+37  ;;  %vm747_vm4 = vmor %vm234_vm3, %vm235_vm12 }
  0xb6   :  { %v217_v59 = vmul.f32 %v596_v57, %v216_v29  ;;  %v272_v27 = vsel %vm643_vm5, %v634_v22, %v267_v6  ;;  %v203_v33 = vadd.f32 %v584_v49, %v202_v58  ;;  %370 = vmatpush.msra.mxu2 %v357_v20  ;;  %v226_v42 = vor.u32 1.1754944e-38, %v225_v35  ;;  %vm772_vm5 = vmor %vm189_vm7, %vm190_vm8 }
  0xb7   :  { %v278_v36 = vadd.f32 %v591_v54, %v277_v11  ;;  %v232_v53 = vmul.f32 %v605_v2, %v231_v23  ;;  %v252_v11 = vsel %vm707_vm9, %v580_v47, %v248_v51  ;;  %v238_v47 = vand.u32 2147483647, %v582_v48 }
  0xb8   :  { %v636_v26 = vpop.eup %478  ;;  %v218_v21 = vadd.f32 %v596_v57, %v217_v59  ;;  %v257_v48 = vsel %vm662_vm10, %v608_v4, %v252_v11  ;;  %v241_v45 = vor.u32 1.1754944e-38, %v240_v17  ;;  %vm793_vm7 = vcmp.eq.f32.partialorder %v193_v60, 8.507059e+37 }
  0xb9   :  { %v290_v40 = vmul.f32 %v636_v26, %v594_v56  ;;  %v282_v1 = vsel %vm674_vm14, %v591_v54, %v278_v36  ;;  %vm295_vm0 = vweird.f32 %v636_v26  ;;  %v233_v10 = vadd.f32 %v605_v2, %v232_v53  ;;  %v356_v36 = vld [vmem:[%s847_s4 + $0x40] sm:$0xff] }
  0xba   :  { %vm294_vm14 = vweird.f32 %v594_v56  ;;  %v287_v34 = vsel %vm284_vm6, %v286_v31, %v282_v1  ;;  %vm739_vm6 = vcmp.eq.f32.partialorder %v223_v30, 8.507059e+37  ;;  %v222_v41 = vsel %vm729_vm2, %v596_v57, %v218_v21  ;;  %371 = vmatpush.msra.mxu2 %v356_v36  ;;  %v349_v1 = vld [vmem:[%s847_s4 + $0x8] sm:$0xff] }
  0xbb   :  { %v291_v55 = vsub.f32 1.0, %v290_v40  ;;  %vm296_vm1 = vmor %vm294_vm14, %vm295_vm0  ;;  %vm205_vm0 = vweird.f32 %v584_v49  ;;  %v237_v22 = vsel %vm747_vm4, %v605_v2, %v233_v10  ;;  %v310_v30 = vmul.f32 %v287_v34, %v549_v25 }
  0xbc   :  { %vm239_vm10 = vcmp.eq.f32.partialorder %v238_v47, 8.507059e+37  ;;  %vm784_vm13 = vmor %vm204_vm11, %vm205_vm0  ;;  %v308_v51 = vmul.f32 %v257_v48, %v535_v12  ;;  %372 = vmatpush.msra.mxu2 %v355_v50  ;;  %v196_v53 = vor.u32 1.1754944e-38, %v195_v62  ;;  %v227_v60 = vsel %vm739_vm6, %v226_v42, %v222_v41  ;;  %v447_v12 = vld [vmem:[%s846_s0] ss:$0 sm:$0xff] }
  0xbd   :  { %v292_v3 = vmul.f32 %v636_v26, %v291_v55  ;;  %v242_v35 = vsel %vm239_vm10, %v241_v45, %v237_v22  ;;  %v207_v52 = vsel %vm784_vm13, %v584_v49, %v203_v33  ;;  %v211_v55 = vor.u32 1.1754944e-38, %v210_v16  ;;  %v353_v49 = vld [vmem:[%s847_s4 + $0x28] sm:$0xff] }
  0xbe   :  { %v314_v58 = vshrl.u32 %v313_v46, 7  ;;  %v192_v24 = vsel %vm772_vm5, %v565_v39, %v620_v13  ;;  %vm209_vm8 = vcmp.eq.f32.partialorder %v208_v7, 8.507059e+37  ;;  %v307_v62 = vmul.f32 %v242_v35, %v551_v28  ;;  %v350_v7 = vld [vmem:[%s847_s4 + $0x10] sm:$0xff] }
  0xbf   :  { %v293_v44 = vadd.f32 %v636_v26, %v292_v3  ;;  %v212_v59 = vsel %vm209_vm8, %v211_v55, %v207_v52  ;;  %v306_v63 = vmul.f32 %v227_v60, %v543_v19  ;;  %v197_v43 = vsel %vm793_vm7, %v196_v53, %v192_v24 }
  0xc0   :  { %vm316_vm11 = vcmp.eq.s32.totalorder %v314_v58, %v447_v12  ;;  %v305_v28 = vmul.f32 %v212_v59, %v537_v14  ;;  %v304_v19 = vmul.f32 %v197_v43, %v532_v9  ;;  %v480_v13 = vmov 0.0   ;;  %v348_v14 = vld [vmem:[%s847_s4] sm:$0xff] }
  0xc1   :  { %v297_v23 = vsel %vm296_vm1, %v636_v26, %v293_v44  ;;  %v322_v39 = vpack.c.bf16 %v307_v62, %v306_v63  ;;  %v435_v0 = vsel %vm316_vm11, 1.0, %v480_v13  ;;  %vm325_vm3 = vcmask 523264  }
  0xc2   :  { %v302_v26 = vsel %vm299_vm15, %v301_v18, %v297_v23  ;;  %v321_v3 = vpack.c.bf16 %v305_v28, %v304_v19  ;;  %v319_v5 = vpack.c.bf16 %v435_v0, %v435_v0  ;;  %vm384_vm9 = vcmask 7168  }
  0xc3   :  { %v311_v40 = vmul.f32 %v302_v26, %v563_v38  ;;  %v309_v38 = vmul.f32 %v272_v27, %v539_v15  ;;  %v354_v15 = vld [vmem:[%s847_s4 + $0x30] sm:$0xff] }
  0xc4   :  { %373 = vmatpush.msra.mxu2 %v354_v15 }
  0xc5   :  { %v324_v2 = vpack.c.bf16 %v311_v40, %v310_v30  ;;  %v323_v16 = vpack.c.bf16 %v309_v38, %v308_v51 }
  0xc6   :  { %374 = vmatpush.msra.mxu2 %v353_v49 }
  0xc7   :  { %333 = vmatpush.bf16.msra.mxu1 %v324_v2 }
  0xc8   :  { %375 = vmatpush.msra.mxu2 %v352_v61 }
  0xca   :  { %376 = vmatpush.msra.mxu2 %v351_v37 }
  0xcb   :  { %334 = vmatpush.bf16.msra.mxu1 %v323_v16 }
  0xcc   :  { %377 = vmatpush.msra.mxu2 %v350_v7 }
  0xce   :  { %378 = vmatpush.msra.mxu2 %v349_v1 }
  0xcf   :  { %335 = vmatpush.bf16.msra.mxu1 %v322_v39 }
  0xd0   :  { %379 = vmatpush.msra.mxu2 %v348_v14 }
  0xd3   :  { %336 = vmatpush.bf16.msra.mxu1 %v321_v3 }
  0xd6   :  { %436 = vmatmul.msk.bf16.vlgmr.msra.gmra.mxu1 %vm325_vm3, %v319_v5 }
 0x153   :  { %v338_v9 = vpop.f32.mrf.mxu1 }
 0x154   :  { %380 = vmatmul.f32.vlgmr.msra.gmra.mxu2 %v338_v9 }
 0x15b   :  { %v340_v6 = vpop.f32.mrf.mxu1 }
 0x1d7   :  { %v381_v31 = vpop.f32.mrf.mxu2 }
 0x1d8   :  { %385 = vst.msk [vmem:[%s848_s5] sm:$0xff] %vm384_vm9, %v381_v31 }

</bundles_post_ra>
